<compile_context>
chip_gen: v7x
topology: tpu7x:2x2x1
jax: 0.10.0
libtpu: 0.0.40
codegen_flags: <defaults>
</compile_context>

<pallas_src>
import functools

import jax
import jax.numpy as jnp
from jax.experimental import pallas as pl
from jax.experimental.pallas import tpu as pltpu


# --------------------------------------------------------------------------
# shared compute: k-tap mean (f32 accumulation) + residual
# --------------------------------------------------------------------------
def _emit_outputs(tap, center, k, res_ref, mean_ref):
    # k is a small static Python int -> fully unrolled accumulation.
    # TODO-free; for very large k on v7x a cumsum-difference would cut VMEM
    # re-reads from O(k) to O(1), but HBM remains the limiter for typical k.
    acc = tap(0)
    for off in range(1, k):
        acc = acc + tap(off)
    mean = acc * (1.0 / k)
    mean_ref[...] = mean.astype(mean_ref.dtype)
    res_ref[...] = (center - mean).astype(res_ref.dtype)


# --------------------------------------------------------------------------
# Path A: whole series per grid step (small L*C) -- fully auto-pipelined.
# --------------------------------------------------------------------------
def _decomp_whole_kernel(x_ref, res_ref, mean_ref, buf_ref, *, k):
    # x_ref: (L, C) VMEM block (one batch element); buf_ref: (L + 2*pad, C).
    L, C = x_ref.shape
    pad = (k - 1) // 2
    xv = x_ref[...]
    buf_ref[pl.ds(pad, L), :] = xv
    if pad > 0:
        buf_ref[pl.ds(0, pad), :] = jnp.broadcast_to(xv[0:1, :], (pad, C))
        buf_ref[pl.ds(pad + L, pad), :] = jnp.broadcast_to(xv[L - 1:L, :], (pad, C))
    _emit_outputs(
        lambda off: buf_ref[pl.ds(off, L), :].astype(jnp.float32),
        xv.astype(jnp.float32),
        k, res_ref, mean_ref)


# --------------------------------------------------------------------------
# Path B: time-tiled, grid = (B, T); halo window DMA'd manually from HBM.
# --------------------------------------------------------------------------
def _decomp_tiled_kernel(x_hbm, res_ref, mean_ref, buf_ref, *, k, TL, L):
    pad = (k - 1) // 2
    W = TL + 2 * pad
    C = buf_ref.shape[1]
    T = L // TL
    b = pl.program_id(0)
    t = pl.program_id(1)

    # Fetch the clamped halo window x[b, s : s + W, :] straight from HBM.
    s = jnp.clip(t * TL - pad, 0, L - W)
    pltpu.sync_copy(x_hbm.at[b, pl.ds(s, W), :], buf_ref)

    def sl(start, size):
        return buf_ref[pl.ds(start, size), :].astype(jnp.float32)

    def edge(row, n):
        return jnp.broadcast_to(buf_ref[pl.ds(row, 1), :], (n, C)).astype(jnp.float32)

    # Interior tiles: s == t*TL - pad, so the buffer *is* the padded window.
    @pl.when(jnp.logical_and(t > 0, t < T - 1))
    def _():
        _emit_outputs(lambda off: sl(off, TL), sl(pad, TL), k, res_ref, mean_ref)

    # First tile: s == 0, buf[r] = x[r]; padded row j -> buf[max(j - pad, 0)].
    @pl.when(t == 0)
    def _():
        def tap(off):
            m = pad - off
            if m <= 0:
                return sl(off - pad, TL)
            return jnp.concatenate([edge(0, m), sl(0, TL - m)], axis=0)
        _emit_outputs(tap, sl(0, TL), k, res_ref, mean_ref)

    # Last tile: s == L - W, buf[r] = x[L-W+r]; padded row j -> buf[min(pad+j, W-1)].
    @pl.when(t == T - 1)
    def _():
        def tap(off):
            m = off - pad
            if m <= 0:
                return sl(pad + off, TL)
            return jnp.concatenate([sl(pad + off, TL - m), edge(W - 1, m)], axis=0)
        _emit_outputs(tap, sl(2 * pad, TL), k, res_ref, mean_ref)


# --------------------------------------------------------------------------
# wrapper
# --------------------------------------------------------------------------
def _auto_time_tile(L, C, pad, dtype):
    """Pick a time tile TL (divisor of L) so each VMEM block stays ~<= 2 MiB."""
    itemsize = jnp.dtype(dtype).itemsize
    bytes_per_row = max(C, 128) * itemsize          # lanes pad to 128 in VMEM
    if (L + 2 * pad) * bytes_per_row <= (2 << 20):
        return L                                    # whole series per step
    max_rows = max((2 << 20) // bytes_per_row, 8)
    for cand in range(min(max_rows, L // 2), max(pad, 7), -1):
        if L % cand == 0 and cand + 2 * pad <= L:
            return cand
    return L   # no usable divisor; fall back to whole-series blocks


def series_decomp2(x, kernel_size, *, time_tile=None):
    """Returns (res, moving_mean), each shaped like x (requires odd kernel_size)."""
    assert kernel_size % 2 == 1, "odd kernel_size required for shape-preserving decomp"
    B, L, C = x.shape
    k = int(kernel_size)
    pad = (k - 1) // 2

    if time_tile is None:
        time_tile = _auto_time_tile(L, C, pad, x.dtype)
    TL = int(time_tile)

    out_shape = (jax.ShapeDtypeStruct((B, L, C), x.dtype),
                 jax.ShapeDtypeStruct((B, L, C), x.dtype))

    if TL >= L or L % TL != 0 or TL + 2 * pad > L or TL < pad:
        # ---- whole-series path: one (L, C) block per batch element ----
        kern = functools.partial(_decomp_whole_kernel, k=k)
        return pl.pallas_call(
            kern,
            out_shape=out_shape,
            grid=(B,),
            in_specs=[pl.BlockSpec((None, L, C), lambda b: (b, 0, 0))],
            out_specs=(pl.BlockSpec((None, L, C), lambda b: (b, 0, 0)),
                       pl.BlockSpec((None, L, C), lambda b: (b, 0, 0))),
            scratch_shapes=[pltpu.VMEM((L + 2 * pad, C), x.dtype)],
            compiler_params=pltpu.CompilerParams(
                dimension_semantics=("parallel",)),
        )(x)

    # ---- time-tiled path: grid (B, T); halo fetched by clamped manual DMA ----
    T = L // TL
    W = TL + 2 * pad
    kern = functools.partial(_decomp_tiled_kernel, k=k, TL=TL, L=L)
    return pl.pallas_call(
        kern,
        out_shape=out_shape,
        grid=(B, T),
        in_specs=[pl.BlockSpec(memory_space=pl.ANY)],   # raw HBM ref, manual DMA
        out_specs=(pl.BlockSpec((None, TL, C), lambda b, t: (b, t, 0)),
                   pl.BlockSpec((None, TL, C), lambda b, t: (b, t, 0))),
        scratch_shapes=[pltpu.VMEM((W, C), x.dtype)],
        compiler_params=pltpu.CompilerParams(
            dimension_semantics=("parallel", "parallel")),
    )(x)


# --------------------------------------------------------------------------
# pure-JAX reference (mirrors the PyTorch forward exactly)
# --------------------------------------------------------------------------
def _series_decomp2_ref(x, kernel_size):
    pad = (kernel_size - 1) // 2
    front = jnp.repeat(x[:, 0:1, :], pad, axis=1)
    end = jnp.repeat(x[:, -1:, :], pad, axis=1)
    xpad = jnp.concatenate([front, x, end], axis=1)
    L = x.shape[1]
    windows = jnp.stack(
        [xpad[:, off:off + L, :] for off in range(kernel_size)], axis=0
    )
    mean = jnp.mean(windows, axis=0)
    return x - mean, mean


if __name__ == "__main__":
    key = jax.random.PRNGKey(0)

    # 1) small shape -> whole-series (auto-pipelined) path.
    B, L, C, k = 2, 16, 8, 5
    x = jax.random.normal(key, (B, L, C), dtype=jnp.float32)
    res, mean = series_decomp2(x, k)
    jax.block_until_ready((res, mean))
    res_r, mean_r = _series_decomp2_ref(x, k)
    assert res.shape == (B, L, C) and mean.shape == (B, L, C)
    assert jnp.allclose(res, res_r, atol=1e-5, rtol=1e-5)
    assert jnp.allclose(mean, mean_r, atol=1e-5, rtol=1e-5)

    # 2) longer series, forced small time tile -> exercises the halo-DMA path.
    B2, L2, C2, k2 = 2, 256, 8, 7
    x2 = jax.random.normal(jax.random.PRNGKey(0), (B2, L2, C2), dtype=jnp.float32)
    res2, mean2 = series_decomp2(x2, k2, time_tile=64)
    jax.block_until_ready((res2, mean2))
    res2_r, mean2_r = _series_decomp2_ref(x2, k2)
    assert jnp.allclose(res2, res2_r, atol=1e-5, rtol=1e-5)
    assert jnp.allclose(mean2, mean2_r, atol=1e-5, rtol=1e-5)

    print("KERNEL_OK")
</pallas_src>

<mosaic_0001>
module attributes {stable_mosaic.version = 11 : i64} {
  func.func @_decomp_whole_kernel(%arg0: i32, %arg1: memref<1x16x8xf32, #tpu.memory_space<vmem>>, %arg2: memref<1x16x8xf32, #tpu.memory_space<vmem>>, %arg3: memref<1x16x8xf32, #tpu.memory_space<vmem>>, %arg4: memref<20x8xf32, #tpu.memory_space<vmem>>) attributes {dimension_semantics = [#tpu.dimension_semantics<parallel>], iteration_bounds = array<i64: 2>, scalar_prefetch = 0 : i64, scratch_operands = 1 : i64, tpu.core_type = #tpu.core_type<tc>, window_params = [{transform_indices = @transform_0, window_bounds = array<i64: 1, 16, 8>}, {transform_indices = @transform_1, window_bounds = array<i64: 1, 16, 8>}, {transform_indices = @transform_2, window_bounds = array<i64: 1, 16, 8>}]} {
    %c0 = arith.constant 0 : index
    %c0_0 = arith.constant 0 : index
    %c0_1 = arith.constant 0 : index
    %0 = vector.load %arg1[%c0, %c0_0, %c0_1] : memref<1x16x8xf32, #tpu.memory_space<vmem>>, vector<1x16x8xf32>
    %1 = vector.shape_cast %0 : vector<1x16x8xf32> to vector<16x8xf32>
    %c2 = arith.constant 2 : index
    %c0_2 = arith.constant 0 : index
    %2 = vector.load %arg4[%c2, %c0_2] : memref<20x8xf32, #tpu.memory_space<vmem>>, vector<16x8xf32>
    tpu.vector_store %arg4[%c2, %c0_2], %1 {strides = array<i32>} : memref<20x8xf32, #tpu.memory_space<vmem>>, vector<16x8xf32>,
    %3 = vector.extract_strided_slice %1 {offsets = [0, 0], sizes = [1, 8], strides = [1, 1]} : vector<16x8xf32> to vector<1x8xf32>
    %4 = vector.shape_cast %3 : vector<1x8xf32> to vector<1x8xf32>
    %5 = vector.broadcast %4 : vector<1x8xf32> to vector<2x8xf32>
    %c0_3 = arith.constant 0 : index
    %c0_4 = arith.constant 0 : index
    %6 = vector.load %arg4[%c0_3, %c0_4] : memref<20x8xf32, #tpu.memory_space<vmem>>, vector<2x8xf32>
    tpu.vector_store %arg4[%c0_3, %c0_4], %5 {strides = array<i32>} : memref<20x8xf32, #tpu.memory_space<vmem>>, vector<2x8xf32>,
    %7 = vector.extract_strided_slice %1 {offsets = [15, 0], sizes = [1, 8], strides = [1, 1]} : vector<16x8xf32> to vector<1x8xf32>
    %8 = vector.shape_cast %7 : vector<1x8xf32> to vector<1x8xf32>
    %9 = vector.broadcast %8 : vector<1x8xf32> to vector<2x8xf32>
    %c18 = arith.constant 18 : index
    %c0_5 = arith.constant 0 : index
    %10 = vector.load %arg4[%c18, %c0_5] : memref<20x8xf32, #tpu.memory_space<vmem>>, vector<2x8xf32>
    tpu.vector_store %arg4[%c18, %c0_5], %9 {strides = array<i32>} : memref<20x8xf32, #tpu.memory_space<vmem>>, vector<2x8xf32>,
    %c0_6 = arith.constant 0 : index
    %c0_7 = arith.constant 0 : index
    %11 = vector.load %arg4[%c0_6, %c0_7] : memref<20x8xf32, #tpu.memory_space<vmem>>, vector<16x8xf32>
    %c1 = arith.constant 1 : index
    %c0_8 = arith.constant 0 : index
    %12 = vector.load %arg4[%c1, %c0_8] : memref<20x8xf32, #tpu.memory_space<vmem>>, vector<16x8xf32>
    %13 = arith.addf %11, %12 : vector<16x8xf32>
    %c2_9 = arith.constant 2 : index
    %c0_10 = arith.constant 0 : index
    %14 = vector.load %arg4[%c2_9, %c0_10] : memref<20x8xf32, #tpu.memory_space<vmem>>, vector<16x8xf32>
    %15 = arith.addf %13, %14 : vector<16x8xf32>
    %c3 = arith.constant 3 : index
    %c0_11 = arith.constant 0 : index
    %16 = vector.load %arg4[%c3, %c0_11] : memref<20x8xf32, #tpu.memory_space<vmem>>, vector<16x8xf32>
    %17 = arith.addf %15, %16 : vector<16x8xf32>
    %c4 = arith.constant 4 : index
    %c0_12 = arith.constant 0 : index
    %18 = vector.load %arg4[%c4, %c0_12] : memref<20x8xf32, #tpu.memory_space<vmem>>, vector<16x8xf32>
    %19 = arith.addf %17, %18 : vector<16x8xf32>
    %cst = arith.constant 2.000000e-01 : f32
    %20 = vector.broadcast %cst : f32 to vector<16x8xf32>
    %21 = arith.mulf %19, %20 : vector<16x8xf32>
    %c0_13 = arith.constant 0 : index
    %c0_14 = arith.constant 0 : index
    %c0_15 = arith.constant 0 : index
    %22 = vector.load %arg3[%c0_13, %c0_14, %c0_15] : memref<1x16x8xf32, #tpu.memory_space<vmem>>, vector<1x16x8xf32>
    %23 = vector.shape_cast %22 : vector<1x16x8xf32> to vector<16x8xf32>
    %24 = vector.shape_cast %21 : vector<16x8xf32> to vector<1x16x8xf32>
    tpu.vector_store %arg3[%c0_13, %c0_14, %c0_15], %24 {strides = array<i32>} : memref<1x16x8xf32, #tpu.memory_space<vmem>>, vector<1x16x8xf32>,
    %25 = arith.subf %1, %21 : vector<16x8xf32>
    %c0_16 = arith.constant 0 : index
    %c0_17 = arith.constant 0 : index
    %c0_18 = arith.constant 0 : index
    %26 = vector.load %arg2[%c0_16, %c0_17, %c0_18] : memref<1x16x8xf32, #tpu.memory_space<vmem>>, vector<1x16x8xf32>
    %27 = vector.shape_cast %26 : vector<1x16x8xf32> to vector<16x8xf32>
    %28 = vector.shape_cast %25 : vector<16x8xf32> to vector<1x16x8xf32>
    tpu.vector_store %arg2[%c0_16, %c0_17, %c0_18], %28 {strides = array<i32>} : memref<1x16x8xf32, #tpu.memory_space<vmem>>, vector<1x16x8xf32>,
    return
  }
  func.func @transform_0(%arg0: i32) -> (i32, i32, i32) {
    %c0_i32 = arith.constant 0 : i32
    %c0_i32_0 = arith.constant 0 : i32
    %c0_i32_1 = arith.constant 0 : i32
    return %arg0, %c0_i32, %c0_i32_0 : i32, i32, i32
  }
  func.func @transform_1(%arg0: i32) -> (i32, i32, i32) {
    %c0_i32 = arith.constant 0 : i32
    %c0_i32_0 = arith.constant 0 : i32
    %c0_i32_1 = arith.constant 0 : i32
    return %arg0, %c0_i32, %c0_i32_0 : i32, i32, i32
  }
  func.func @transform_2(%arg0: i32) -> (i32, i32, i32) {
    %c0_i32 = arith.constant 0 : i32
    %c0_i32_0 = arith.constant 0 : i32
    %c0_i32_1 = arith.constant 0 : i32
    return %arg0, %c0_i32, %c0_i32_0 : i32, i32, i32
  }
}

</mosaic_0001>

<bundles_post_ra>
// kernel: tpu_custom_call.1
= control target key start
LH: loop header
LB: loop body
LE: loop exit
PB: predicated region body
PF: predicated region fallthrough
CT: control target
= control target key end

     0   :  { %s334_s9 = smov 0   ;;  %s365_s0 = inlined_call_operand.vmem [shape: f32[2,16,8], index: 0, kind: input, shape index: {}]   ;;  %s366_s1 = inlined_call_operand.vmem [shape: f32[2,16,8], index: 1, kind: output, shape index: {0}]   ;;  %s367_s2 = inlined_call_operand.vmem [shape: f32[2,16,8], index: 2, kind: output, shape index: {1}]  }
   0x1 LB: > { %s287_s10 = sadd.s32 4294967295, %s317_s9   ;;  %p291_p0 = scmp.ge.s32.totalorder %s317_s9, 1  ;;  %s317_s9 = sphi %s334_s9, %s13_s9  }
   0x2   : > { %p115_p1 = scmp.lt.s32.totalorder %s317_s9, 3 }
   0x4   : > { %p116_p2 = pnand %p291_p0, %p115_p1 }
   0x5   : > { %p142_p3 = scmp.lt.s32.totalorder (!%p116_p2), %s287_s10, 1  ;;  %v162_v0 = vlaneseq (!%p116_p2)  ;;  %vm159_vm0 = vcmask (!%p116_p2), 64512   ;;  %vm166_vm1 = vcmask (!%p116_p2), 58368  }
   0x6   : > { %119 = sbr.rel (%p116_p2) target bundleno = 41 (0x29), region = 24 }
   0x7   : > { %v163_v1 = vshrl.u32 (!%p116_p2), %v162_v0, 7 }
   0x9   : > { %v164_v2 = vsub.s32 (!%p116_p2), 0, %v163_v1  ;;  %v170_v3 = vsub.s32 (!%p116_p2), 7, %v163_v1 }
   0xd   : > { %s369_s10 = smov (!%p142_p3, %s287_s10), 1 }
   0xe   : > { %s342_s11 = sshll.u32 %s369_s10, 4 }
   0xf   : > { %s146_s14 = scalar_lea.vmem %s365_s0, %s342_s11  ;;  %s156_s17 = scalar_lea.vmem %s367_s2, %s342_s11 }
  0x10   : > { %v157_v4 = vld [vmem:[%s146_s14] sm:$0xff]  ;;  %v158_v5 = vld [vmem:[%s146_s14 + $0x8] sm:$0xff]  ;;  %s151_s20 = scalar_lea.vmem %s366_s1, %s342_s11 }
  0x11   : > { %160 = vst.msk [vmem:[#allocation2 + $0x2] sm:$0xff] %vm159_vm0, %v157_v4  ;;  %161 = vst.msk [vmem:[#allocation2 + $0xa] sm:$0xff] %vm159_vm0, %v158_v5  ;;  %v165_v6 = vrot.slane %v157_v4, %v164_v2  ;;  %v171_v7 = vrot.slane %v158_v5, %v170_v3 }
  0x13   : > { %167 = vst.msk [vmem:[#allocation2] sm:$0x3] %vm166_vm1, %v165_v6  ;;  %172 = vst.msk [vmem:[#allocation2 + $0x12] sm:$0x3] %vm166_vm1, %v171_v7 }
  0x18   : > { %v174_v8 = vld [vmem:[#allocation2 + $0x8] sm:$0xff] }
  0x19   : > { %v176_v9 = vld [vmem:[#allocation2 + $0x9] sm:$0xff] }
  0x1a   : > { %v180_v10 = vld [vmem:[#allocation2 + $0xa] sm:$0xff]  ;;  %v178_v11 = vadd.f32 %v176_v9, %v174_v8  ;;  %v173_v12 = vld [vmem:[#allocation2] sm:$0xff] }
  0x1b   : > { %v175_v14 = vld [vmem:[#allocation2 + $0x1] sm:$0xff]  ;;  %v184_v15 = vld [vmem:[#allocation2 + $0xb] sm:$0xff] }
  0x1c   : > { %v182_v13 = vadd.f32 %v180_v10, %v178_v11  ;;  %v177_v16 = vadd.f32 %v175_v14, %v173_v12  ;;  %v179_v18 = vld [vmem:[#allocation2 + $0x2] sm:$0xff]  ;;  %v188_v19 = vld [vmem:[#allocation2 + $0xc] sm:$0xff] }
  0x1d   : > { %v183_v22 = vld [vmem:[#allocation2 + $0x3] sm:$0xff] }
  0x1e   : > { %v186_v17 = vadd.f32 %v184_v15, %v182_v13  ;;  %v181_v20 = vadd.f32 %v179_v18, %v177_v16  ;;  %v187_v25 = vld [vmem:[#allocation2 + $0x4] sm:$0xff] }
  0x20   : > { %v190_v21 = vadd.f32 %v188_v19, %v186_v17  ;;  %v185_v23 = vadd.f32 %v183_v22, %v181_v20 }
  0x22   : > { %v192_v24 = vmul.f32 0.2, %v190_v21  ;;  %v189_v26 = vadd.f32 %v187_v25, %v185_v23 }
  0x24   : > { %194 = vst.msk [vmem:[%s156_s17 + $0x8] sm:$0xff] %vm159_vm0, %v192_v24  ;;  %v196_v27 = vsub.f32 %v158_v5, %v192_v24  ;;  %v191_v28 = vmul.f32 0.2, %v189_v26 }
  0x26   : > { %198 = vst.msk [vmem:[%s151_s20 + $0x8] sm:$0xff] %vm159_vm0, %v196_v27  ;;  %193 = vst.msk [vmem:[%s156_s17] sm:$0xff] %vm159_vm0, %v191_v28  ;;  %v195_v29 = vsub.f32 %v157_v4, %v191_v28 }
  0x28   : > { %197 = vst.msk [vmem:[%s151_s20] sm:$0xff] %vm159_vm0, %v195_v29 }
  0x29 PF: > { %s13_s9 = sadd.s32 1, %s317_s9  }
  0x2a   : > { %p10_p4 = scmp.ge.s32.totalorder %s13_s9, 4  }
  0x2c   :  { %12 = sbr.rel (!%p10_p4) target bundleno = 1 (0x1), region = 66 }

</bundles_post_ra>
